<compile_context>
chip_gen: v6e
topology: v6e:2x2x1
jax: 0.10.0
libtpu: 0.0.40
codegen_flags: <defaults>
</compile_context>

<pallas_src>
import jax
import jax.numpy as jnp
from jax.experimental import pallas as pl
from jax.experimental.pallas import tpu as pltpu


def _round_up(x, m):
    return ((x + m - 1) // m) * m


def critic_mlp_kernel(xt_ref, w1_ref, b1_ref, w2_ref, b2_ref, w3_ref, b3_ref,
                      o_ref):
    """Fused critic MLP on one batch tile, computed transposed.

    xt_ref: (S, TM)   input features, batch on the lane axis
    w1_ref: (H, S)    b1_ref: (H, 1)
    w2_ref: (H, H)    b2_ref: (H, 1)
    w3_ref: (H, 1)    b3_ref: (1, 1)
    o_ref : (1, TM)   lane-dense value slab (batch on lanes)
    """
    xt = xt_ref[...]                                             # (S, TM)

    # Layer 1: (H,S) @ (S,TM) -> (H,TM) on the MXU, f32 accumulation.
    h1 = jnp.dot(w1_ref[...], xt,
                 preferred_element_type=jnp.float32) + b1_ref[...]
    h1 = jnp.maximum(h1, 0.0).astype(w2_ref.dtype)               # ReLU

    # Layer 2: (H,H) @ (H,TM) -> (H,TM) on the MXU, f32 accumulation.
    h2 = jnp.dot(w2_ref[...], h1,
                 preferred_element_type=jnp.float32) + b2_ref[...]
    h2 = jnp.maximum(h2, 0.0)                                    # ReLU, f32

    # Layer 3 (out_features=1): VPU broadcast-multiply + sublane reduction
    # instead of an N=1 MXU pass.  Result is (1, TM): lane-dense.
    v = jnp.sum(h2 * w3_ref[...], axis=0, keepdims=True) + b3_ref[...]
    o_ref[...] = v.astype(o_ref.dtype)


def critic_forward(x, params, *, tm=None, compute_dtype=jnp.float32):
    """CriticNetwork forward pass.

    x:      (B, S) float32, row-major like PyTorch.
    params: (w1, b1, w2, b2, w3, b3) in PyTorch nn.Linear layout:
            w: (out_features, in_features), b: (out_features,).
    Returns (B, 1) float32 values.
    """
    w1, b1, w2, b2, w3, b3 = params
    B, S = x.shape
    H = w1.shape[0]

    # Batch tile: multiple of 128 (lane width); big tiles amortize the
    # ~0.35 us per-grid-step overhead.  Not VMEM-limited at these sizes on
    # any generation (v5e/v6e 128 MiB, v7x 64 MiB), so keep it large.
    if tm is None:
        tm = min(4096, _round_up(B, 128))
    tm = _round_up(tm, 128)
    B_pad = _round_up(B, tm)
    grid = B_pad // tm

    # Layout plumbing (outside the kernel): pad batch, put batch on lanes,
    # cast the only streams that scale with batch / weight bytes.
    if B_pad != B:
        x = jnp.pad(x, ((0, B_pad - B), (0, 0)))
    xt = x.T.astype(compute_dtype)                  # (S, B_pad)
    w1c = w1.astype(compute_dtype)                  # (H, S)
    w2c = w2.astype(compute_dtype)                  # (H, H)
    b1c = b1.reshape(H, 1).astype(jnp.float32)
    b2c = b2.reshape(H, 1).astype(jnp.float32)
    w3c = w3.reshape(H, 1).astype(jnp.float32)      # column for VPU reduce
    b3c = b3.reshape(1, 1).astype(jnp.float32)

    itemsize = jnp.dtype(compute_dtype).itemsize
    cost = pl.CostEstimate(
        flops=int(2 * B_pad * (S * H + H * H + H)),
        transcendentals=0,
        bytes_accessed=int(S * B_pad * itemsize
                           + (H * S + H * H) * itemsize
                           + (3 * H + 1) * 4
                           + B_pad * 4),
    )

    out = pl.pallas_call(
        critic_mlp_kernel,
        out_shape=jax.ShapeDtypeStruct((1, B_pad), jnp.float32),
        grid_spec=pltpu.PrefetchScalarGridSpec(
            num_scalar_prefetch=0,
            grid=(grid,),
            in_specs=[
                pl.BlockSpec((S, tm), lambda i: (0, i)),   # streamed activations
                pl.BlockSpec((H, S), lambda i: (0, 0)),    # resident weights
                pl.BlockSpec((H, 1), lambda i: (0, 0)),
                pl.BlockSpec((H, H), lambda i: (0, 0)),
                pl.BlockSpec((H, 1), lambda i: (0, 0)),
                pl.BlockSpec((H, 1), lambda i: (0, 0)),
                pl.BlockSpec((1, 1), lambda i: (0, 0)),
            ],
            out_specs=pl.BlockSpec((1, tm), lambda i: (0, i)),
        ),
        compiler_params=pltpu.CompilerParams(
            dimension_semantics=("parallel",),     # v7x: shard batch tiles over 2 TCs
        ),
        cost_estimate=cost,
    )(xt, w1c, b1c, w2c, b2c, w3c, b3c)

    return out.reshape(B_pad, 1)[:B]


def init_params(key, state_num, hidden_units_num):
    """PyTorch nn.Linear-style init: uniform(-1/sqrt(fan_in), 1/sqrt(fan_in)),
    weights stored (out_features, in_features), biases (out_features,)."""
    ks = jax.random.split(key, 6)

    def lin(kw, kb, fan_in, fan_out):
        bound = 1.0 / (fan_in ** 0.5)
        w = jax.random.uniform(kw, (fan_out, fan_in), jnp.float32, -bound, bound)
        b = jax.random.uniform(kb, (fan_out,), jnp.float32, -bound, bound)
        return w, b

    w1, b1 = lin(ks[0], ks[1], state_num, hidden_units_num)
    w2, b2 = lin(ks[2], ks[3], hidden_units_num, hidden_units_num)
    w3, b3 = lin(ks[4], ks[5], hidden_units_num, 1)
    return (w1, b1, w2, b2, w3, b3)


def reference_forward(x, params):
    """Plain-JAX reference, identical math to the PyTorch module."""
    w1, b1, w2, b2, w3, b3 = params
    h1 = jnp.maximum(x @ w1.T + b1, 0.0)
    h2 = jnp.maximum(h1 @ w2.T + b2, 0.0)
    return h2 @ w3.T + b3


# TODO(synk): the Adam optimizer attached to the PyTorch module is training
# machinery, not part of forward(), and is intentionally not implemented here.

if __name__ == "__main__":
    state_num = 8          # state vector size
    hidden_units_num = 32  # hidden layer width

    key = jax.random.PRNGKey(0)
    k_x, k_x2, k_p = jax.random.split(key, 3)
    params = init_params(k_p, state_num, hidden_units_num)

    # Small-batch check (toy shape matching the module).
    x = jax.random.normal(k_x, (8, state_num), dtype=jnp.float32)
    out = jax.block_until_ready(critic_forward(x, params))
    ref = reference_forward(x, params)
    assert out.shape == (8, 1)
    assert jnp.allclose(out, ref, atol=1e-4, rtol=1e-4)

    # Multi-tile batch grid check (exercises padding + grid + resident weights).
    x2 = jax.random.normal(k_x2, (600, state_num), dtype=jnp.float32)
    out2 = jax.block_until_ready(critic_forward(x2, params, tm=256))
    ref2 = reference_forward(x2, params)
    assert out2.shape == (600, 1)
    assert jnp.allclose(out2, ref2, atol=1e-4, rtol=1e-4)

    # bf16 activation/weight stream (v6e/v7x fast path), f32 accumulation.
    out_bf16 = jax.block_until_ready(
        critic_forward(x2, params, tm=256, compute_dtype=jnp.bfloat16))
    assert out_bf16.shape == (600, 1)
    assert float(jnp.max(jnp.abs(out_bf16 - ref2))) < 5e-2

    print("KERNEL_OK")
</pallas_src>

<mosaic_0001>
module attributes {stable_mosaic.version = 11 : i64} {
  func.func @critic_mlp_kernel(%arg0: i32, %arg1: memref<8x128xf32, #tpu.memory_space<vmem>>, %arg2: memref<32x8xf32, #tpu.memory_space<vmem>>, %arg3: memref<32x1xf32, #tpu.memory_space<vmem>>, %arg4: memref<32x32xf32, #tpu.memory_space<vmem>>, %arg5: memref<32x1xf32, #tpu.memory_space<vmem>>, %arg6: memref<32x1xf32, #tpu.memory_space<vmem>>, %arg7: memref<1x1xf32, #tpu.memory_space<vmem>>, %arg8: memref<1x128xf32, #tpu.memory_space<vmem>>) attributes {dimension_semantics = [#tpu.dimension_semantics<parallel>], iteration_bounds = array<i64: 1>, scalar_prefetch = 0 : i64, scratch_operands = 0 : i64, tpu.core_type = #tpu.core_type<tc>, window_params = [{transform_indices = @transform_0, window_bounds = array<i64: 8, 128>}, {pipeline_mode = #tpu.pipeline_mode<synchronous>, transform_indices = @transform_1, window_bounds = array<i64: 32, 8>}, {pipeline_mode = #tpu.pipeline_mode<synchronous>, transform_indices = @transform_2, window_bounds = array<i64: 32, 1>}, {pipeline_mode = #tpu.pipeline_mode<synchronous>, transform_indices = @transform_3, window_bounds = array<i64: 32, 32>}, {pipeline_mode = #tpu.pipeline_mode<synchronous>, transform_indices = @transform_4, window_bounds = array<i64: 32, 1>}, {pipeline_mode = #tpu.pipeline_mode<synchronous>, transform_indices = @transform_5, window_bounds = array<i64: 32, 1>}, {pipeline_mode = #tpu.pipeline_mode<synchronous>, transform_indices = @transform_6, window_bounds = array<i64: 1, 1>}, {transform_indices = @transform_7, window_bounds = array<i64: 1, 128>}]} {
    %c0 = arith.constant 0 : index
    %c0_0 = arith.constant 0 : index
    %0 = vector.load %arg1[%c0, %c0_0] : memref<8x128xf32, #tpu.memory_space<vmem>>, vector<8x128xf32>
    %c0_1 = arith.constant 0 : index
    %c0_2 = arith.constant 0 : index
    %1 = vector.load %arg2[%c0_1, %c0_2] : memref<32x8xf32, #tpu.memory_space<vmem>>, vector<32x8xf32>
    %cst = arith.constant dense<0.000000e+00> : vector<32x128xf32>
    %2 = tpu.matmul %1, %0, %cst {dimension_numbers = #tpu.dot_dimension_numbers<[1], [0], [0], [1], [0, 0, 1, 1], [], []>} : vector<32x8xf32>, vector<8x128xf32>, vector<32x128xf32> -> vector<32x128xf32>
    %c0_3 = arith.constant 0 : index
    %c0_4 = arith.constant 0 : index
    %3 = vector.load %arg3[%c0_3, %c0_4] : memref<32x1xf32, #tpu.memory_space<vmem>>, vector<32x1xf32>
    %4 = vector.broadcast %3 : vector<32x1xf32> to vector<32x128xf32>
    %5 = arith.addf %2, %4 : vector<32x128xf32>
    %cst_5 = arith.constant 0.000000e+00 : f32
    %6 = vector.broadcast %cst_5 : f32 to vector<32x128xf32>
    %7 = arith.maximumf %5, %6 : vector<32x128xf32>
    %c0_6 = arith.constant 0 : index
    %c0_7 = arith.constant 0 : index
    %8 = vector.load %arg4[%c0_6, %c0_7] : memref<32x32xf32, #tpu.memory_space<vmem>>, vector<32x32xf32>
    %cst_8 = arith.constant dense<0.000000e+00> : vector<32x128xf32>
    %9 = tpu.matmul %8, %7, %cst_8 {dimension_numbers = #tpu.dot_dimension_numbers<[1], [0], [0], [1], [0, 0, 1, 1], [], []>} : vector<32x32xf32>, vector<32x128xf32>, vector<32x128xf32> -> vector<32x128xf32>
    %c0_9 = arith.constant 0 : index
    %c0_10 = arith.constant 0 : index
    %10 = vector.load %arg5[%c0_9, %c0_10] : memref<32x1xf32, #tpu.memory_space<vmem>>, vector<32x1xf32>
    %11 = vector.broadcast %10 : vector<32x1xf32> to vector<32x128xf32>
    %12 = arith.addf %9, %11 : vector<32x128xf32>
    %cst_11 = arith.constant 0.000000e+00 : f32
    %13 = vector.broadcast %cst_11 : f32 to vector<32x128xf32>
    %14 = arith.maximumf %12, %13 : vector<32x128xf32>
    %c0_12 = arith.constant 0 : index
    %c0_13 = arith.constant 0 : index
    %15 = vector.load %arg6[%c0_12, %c0_13] : memref<32x1xf32, #tpu.memory_space<vmem>>, vector<32x1xf32>
    %16 = vector.broadcast %15 : vector<32x1xf32> to vector<32x128xf32>
    %17 = arith.mulf %14, %16 : vector<32x128xf32>
    %cst_14 = arith.constant dense<0.000000e+00> : vector<128xf32>
    %18 = vector.multi_reduction <add>, %17, %cst_14 [0] : vector<32x128xf32> to vector<128xf32>
    %19 = vector.shape_cast %18 : vector<128xf32> to vector<1x128xf32>
    %c0_15 = arith.constant 0 : index
    %c0_16 = arith.constant 0 : index
    %20 = vector.load %arg7[%c0_15, %c0_16] : memref<1x1xf32, #tpu.memory_space<vmem>>, vector<1x1xf32>
    %21 = vector.broadcast %20 : vector<1x1xf32> to vector<1x128xf32>
    %22 = arith.addf %19, %21 : vector<1x128xf32>
    %c0_17 = arith.constant 0 : index
    %c0_18 = arith.constant 0 : index
    %23 = vector.load %arg8[%c0_17, %c0_18] : memref<1x128xf32, #tpu.memory_space<vmem>>, vector<1x128xf32>
    tpu.vector_store %arg8[%c0_17, %c0_18], %22 {strides = array<i32>} : memref<1x128xf32, #tpu.memory_space<vmem>>, vector<1x128xf32>,
    return
  }
  func.func @transform_0(%arg0: i32) -> (i32, i32) {
    %c0_i32 = arith.constant 0 : i32
    %c0_i32_0 = arith.constant 0 : i32
    return %c0_i32, %arg0 : i32, i32
  }
  func.func @transform_1(%arg0: i32) -> (i32, i32) {
    %c0_i32 = arith.constant 0 : i32
    %c0_i32_0 = arith.constant 0 : i32
    %c0_i32_1 = arith.constant 0 : i32
    return %c0_i32, %c0_i32_0 : i32, i32
  }
  func.func @transform_2(%arg0: i32) -> (i32, i32) {
    %c0_i32 = arith.constant 0 : i32
    %c0_i32_0 = arith.constant 0 : i32
    %c0_i32_1 = arith.constant 0 : i32
    return %c0_i32, %c0_i32_0 : i32, i32
  }
  func.func @transform_3(%arg0: i32) -> (i32, i32) {
    %c0_i32 = arith.constant 0 : i32
    %c0_i32_0 = arith.constant 0 : i32
    %c0_i32_1 = arith.constant 0 : i32
    return %c0_i32, %c0_i32_0 : i32, i32
  }
  func.func @transform_4(%arg0: i32) -> (i32, i32) {
    %c0_i32 = arith.constant 0 : i32
    %c0_i32_0 = arith.constant 0 : i32
    %c0_i32_1 = arith.constant 0 : i32
    return %c0_i32, %c0_i32_0 : i32, i32
  }
  func.func @transform_5(%arg0: i32) -> (i32, i32) {
    %c0_i32 = arith.constant 0 : i32
    %c0_i32_0 = arith.constant 0 : i32
    %c0_i32_1 = arith.constant 0 : i32
    return %c0_i32, %c0_i32_0 : i32, i32
  }
  func.func @transform_6(%arg0: i32) -> (i32, i32) {
    %c0_i32 = arith.constant 0 : i32
    %c0_i32_0 = arith.constant 0 : i32
    %c0_i32_1 = arith.constant 0 : i32
    return %c0_i32, %c0_i32_0 : i32, i32
  }
  func.func @transform_7(%arg0: i32) -> (i32, i32) {
    %c0_i32 = arith.constant 0 : i32
    %c0_i32_0 = arith.constant 0 : i32
    return %c0_i32, %arg0 : i32, i32
  }
}

</mosaic_0001>

<bundles_post_ra>
// kernel: tpu_custom_call.1
= control target key start
LH: loop header
LB: loop body
LE: loop exit
PB: predicated region body
PF: predicated region fallthrough
CT: control target
= control target key end

     0   :  { %s549_s0 = inlined_call_operand.vmem [shape: f32[8,128], index: 0, kind: input, shape index: {}]   ;;  %s550_s1 = inlined_call_operand.vmem [shape: f32[32,8], index: 1, kind: input, shape index: {}]   ;;  %s551_s2 = inlined_call_operand.vmem [shape: f32[32,1], index: 2, kind: input, shape index: {}]   ;;  %s552_s3 = inlined_call_operand.vmem [shape: f32[32,32], index: 3, kind: input, shape index: {}]   ;;  %s553_s4 = inlined_call_operand.vmem [shape: f32[32,1], index: 4, kind: input, shape index: {}]   ;;  %s554_s5 = inlined_call_operand.vmem [shape: f32[32,1], index: 5, kind: input, shape index: {}]   ;;  %s555_s6 = inlined_call_operand.<no memory space> [shape: f32[1,1], index: 6, kind: input, shape index: {}]   ;;  %s556_s7 = inlined_call_operand.hbm [shape: f32[1,128], index: 7, kind: output, shape index: {}]  }
   0x1   :  { %v12_v0 = vstv %s555_s6 }
   0x2   :  { %13 = vst [vmem:[#allocation2] sm:$0x1] %v12_v0 }
   0x3   :  { %v29_v1 = vld [vmem:[%s549_s0] sm:$0xff]  ;;  %vm58_vm0 = vcmask 64512   ;;  %v31_v3 = vld [vmem:[%s550_s1 + $0x8] sm:$0xff]  ;;  %v32_v4 = vld [vmem:[%s550_s1 + $0x10] sm:$0xff]  ;;  %v430_v6 = vmov 0  }
   0x4   :  { %v30_v2 = vld [vmem:[%s550_s1] sm:$0xff]  ;;  %374 = vmatprep.subr.mxu0 %v29_v1  ;;  %v37_v5 = vld [vmem:[%s551_s2 + $0x18] sm:$0xff]  ;;  %406 = vset.pattern.permute.xlu0 %v430_v6  ;;  %v35_v7 = vld [vmem:[%s551_s2 + $0x8] sm:$0xff] }
   0x5   :  { %376 = vmatprep.mubr.msk.f32.mxu0 %vm58_vm0, %v30_v2  ;;  %375 = vmatpush3.msra.mxu0 %v29_v1  ;;  %v33_v8 = vld [vmem:[%s550_s1 + $0x18] sm:$0xff]  ;;  %v36_v9 = vld [vmem:[%s551_s2 + $0x10] sm:$0xff]  ;;  %v34_v10 = vld [vmem:[%s551_s2] sm:$0xff] }
   0x6   :  { %377 = vmatmul.mubr.msk.f32.vlgmr.msra.gmra.mxu0 %vm58_vm0, %v31_v3  ;;  %55 = vperm.xlu0 %406, %v37_v5  }
   0x7   :  { %379 = vmatprep.mubr.msk.f32.mxu0 %vm58_vm0, %v32_v4  ;;  %407 = vset.pattern.permute.xlu1 %v430_v6 }
   0x8   :  { %45 = vperm.xlu1 %407, %v35_v7  }
   0x9   :  { %14 = vsyncpa [#allocation4], 0  ;;  %v164_v11 = vld [vmem:[%s553_s4] sm:$0xff]  ;;  %v165_v12 = vld [vmem:[%s553_s4 + $0x8] sm:$0xff]  ;;  %vm188_vm1 = vcmask 261120   ;;  %v333_v2 = vlaneseq }
   0xa   :  { %380 = vmatmul.mubr.msk.f32.gmra.mxu0 %vm58_vm0, %v33_v8  ;;  %50 = vperm.xlu0 %406, %v36_v9   ;;  %v166_v13 = vld [vmem:[%s553_s4 + $0x10] sm:$0xff]  ;;  %v167_v14 = vld [vmem:[%s553_s4 + $0x18] sm:$0xff]  ;;  %v290_v15 = vld [vmem:[%s554_s5] sm:$0xff] }
   0xb   :  { %v291_v16 = vld [vmem:[%s554_s5 + $0x8] sm:$0xff]  ;;  %v292_v17 = vld [vmem:[%s554_s5 + $0x10] sm:$0xff]  ;;  %v293_v18 = vld [vmem:[%s554_s5 + $0x18] sm:$0xff]  ;;  %v334_v5 = vshrl.u32 %v333_v2, 7 }
   0xc   :  { %40 = vperm.xlu1 %407, %v34_v10   ;;  %v327_v19 = vld [vmem:[#allocation2] sm:$0x1]  ;;  %v162_v21 = vld [vmem:[%s552_s3 + $0x10] sm:$0xff]  ;;  %v161_v38 = vld [vmem:[%s552_s3 + $0x8] sm:$0xff] }
   0xd   :  { %v160_v20 = vld [vmem:[%s552_s3] sm:$0xff]  ;;  %393 = vmatprep.mubr.msk.f32.mxu1 %vm188_vm1, %v162_v21  ;;  %v163_v39 = vld [vmem:[%s552_s3 + $0x18] sm:$0xff]  ;;  %v335_v8 = vsub.s32 0, %v334_v5  ;;  %s431_s3 = smov [#allocation3]  }
   0xe   :  { %170 = vperm.xlu0 %406, %v164_v11   ;;  %390 = vmatprep.mubr.msk.f32.mxu0 %vm188_vm1, %v160_v20  ;;  %s345_s14 = sshll.u32 %s431_s3, 4  ;;  %s346_s14 = int_to_ptr.vmem [resolvable:$true] %s345_s14 }
   0xf   :  { %s408_s15 = scalar_lea.vmem %s346_s14, 16  ;;  %s412_s16 = scalar_lea.vmem %s346_s14, 32 }
  0x10   :  { %175 = vperm.xlu1 %407, %v165_v12   ;;  %p409_p0 = scmp.ne.s32.totalorder %s346_s14, %s408_s15  ;;  %p413_p1 = scmp.lt.s32.totalorder %s346_s14, %s346_s14 }
  0x11   :  { %p414_p2 = scmp.lt.s32.totalorder %s412_s16, %s408_s15 }
  0x12   :  { %180 = vperm.xlu0 %406, %v166_v13  }
  0x13   :  { %p415_p3 = por %p414_p2, %p413_p1 }
  0x14   :  { %185 = vperm.xlu1 %407, %v167_v14  }
  0x15   :  { %p416_p4 = pnand %p415_p3, %p409_p0 }
  0x16   :  { %296 = vperm.xlu0 %406, %v290_v15  }
  0x18   :  { %301 = vperm.xlu1 %407, %v291_v16  }
  0x1a   :  { %306 = vperm.xlu0 %406, %v292_v17  }
  0x1c   :  { %311 = vperm.xlu1 %407, %v293_v18  }
  0x1e   :  { %330 = vperm.xlu0 %406, %v327_v19  }
  0x81   :  { %v56_v22 = vpop.permute.xlu0 %55 }
  0x83   :  { %v46_v24 = vpop.permute.xlu1 %45 }
  0x85   :  { %v51_v28 = vpop.permute.xlu0 %50 }
  0x87   :  { %v41_v33 = vpop.permute.xlu1 %40 }
  0x89   :  { %v171_v40 = vpop.permute.xlu0 %170 }
  0x8b   :  { %v176_v41 = vpop.permute.xlu1 %175 }
  0x8d   :  { %v181_v42 = vpop.permute.xlu0 %180 }
  0x8f   :  { %v186_v43 = vpop.permute.xlu1 %185 }
  0x91   :  { %v297_v46 = vpop.permute.xlu0 %296 }
  0x93   :  { %v302_v54 = vpop.permute.xlu1 %301 }
  0x95   :  { %v307_v60 = vpop.permute.xlu0 %306 }
  0x97   :  { %v312_v63 = vpop.permute.xlu1 %311 }
  0x99   :  { %v331_v10 = vpop.permute.xlu0 %330 }
  0x9a   :  { %v336_v12 = vrot.slane %v331_v10, %v335_v8 }
  0xc6   :  { %v378_v23 = vpop.f32.mrf.mxu0 }
  0xc7   :  { %v143_v30 = vadd.f32 %v378_v23, %v46_v24 }
  0xc8   :  { %v137_v25 = vpop.f32.mrf.mxu0 }
  0xc9   :  { %v138_v34 = vadd.f32 %v137_v25, %v41_v33  ;;  %v157_v36 = vmax.f32 %v143_v30, 0.0 }
  0xca   :  { %v381_v26 = vpop.f32.mrf.mxu0 }
  0xcb   :  { %v153_v27 = vadd.f32 %v381_v26, %v56_v22  ;;  %v156_v37 = vmax.f32 %v138_v34, 0.0 }
  0xcc   :  { %v147_v29 = vpop.f32.mrf.mxu0 }
  0xcd   :  { %v159_v31 = vmax.f32 %v153_v27, 0.0  ;;  %v148_v32 = vadd.f32 %v147_v29, %v51_v28 }
  0xcf   :  { %v158_v35 = vmax.f32 %v148_v32, 0.0  ;;  %382 = vmatprep.subr.mxu0 %v159_v31  ;;  %396 = vmatprep.subr.mxu1 %v159_v31 }
  0xd0   :  { %383 = vmatpush3.msra.mxu0 %v159_v31  ;;  %400 = vmatpush3.msra.mxu1 %v159_v31 }
  0xd1   :  { %384 = vmatprep.subr.mxu0 %v158_v35  ;;  %397 = vmatprep.subr.mxu1 %v158_v35 }
  0xd2   :  { %385 = vmatpush3.msra.mxu0 %v158_v35  ;;  %401 = vmatpush3.msra.mxu1 %v158_v35 }
  0xd3   :  { %386 = vmatprep.subr.mxu0 %v157_v36  ;;  %398 = vmatprep.subr.mxu1 %v157_v36 }
  0xd4   :  { %387 = vmatpush3.msra.mxu0 %v157_v36  ;;  %402 = vmatpush3.msra.mxu1 %v157_v36 }
  0xd5   :  { %388 = vmatprep.subr.mxu0 %v156_v37  ;;  %399 = vmatprep.subr.mxu1 %v156_v37 }
  0xd6   :  { %389 = vmatpush3.msra.mxu0 %v156_v37  ;;  %403 = vmatpush3.msra.mxu1 %v156_v37 }
  0xd7   :  { %391 = vmatmul.mubr.msk.f32.vlgmr.msra.gmra.mxu0 %vm188_vm1, %v161_v38  ;;  %394 = vmatmul.mubr.msk.f32.vlgmr.msra.gmra.mxu1 %vm188_vm1, %v163_v39 }
 0x197   :  { %v392_v44 = vpop.f32.mrf.mxu0  ;;  %v395_v45 = vpop.f32.mrf.mxu1 }
 0x198   :  { %v273_v47 = vadd.f32 %v392_v44, %v176_v41  ;;  %v283_v51 = vadd.f32 %v395_v45, %v186_v43 }
 0x199   :  { %v267_v48 = vpop.f32.mrf.mxu0  ;;  %v277_v49 = vpop.f32.mrf.mxu1 }
 0x19a   :  { %v287_v50 = vmax.f32 %v273_v47, 0.0  ;;  %v268_v52 = vadd.f32 %v267_v48, %v171_v40  ;;  %v278_v53 = vadd.f32 %v277_v49, %v181_v42  ;;  %v289_v58 = vmax.f32 %v283_v51, 0.0 }
 0x19c   :  { %v286_v55 = vmax.f32 %v268_v52, 0.0  ;;  %v288_v56 = vmax.f32 %v278_v53, 0.0  ;;  %v315_v57 = vmul.f32 %v302_v54, %v287_v50  ;;  %v317_v0 = vmul.f32 %v312_v63, %v289_v58 }
 0x19e   :  { %v314_v59 = vmul.f32 %v297_v46, %v286_v55  ;;  %v316_v62 = vmul.f32 %v307_v60, %v288_v56 }
 0x1a0   :  { %v318_v61 = vadd.f32 %v315_v57, %v314_v59 }
 0x1a2   :  { %v319_v1 = vadd.f32 %v318_v61, %v316_v62 }
 0x1a4   :  { %v320_v3 = vadd.f32 %v319_v1, %v317_v0 }
 0x1a6   :  { %v321_v4 = vrot.slane %v320_v3, 4 }
 0x1a8   :  { %v322_v6 = vadd.f32 %v321_v4, %v320_v3 }
 0x1aa   :  { %v323_v7 = vrot.slane %v322_v6, 2 }
 0x1ac   :  { %v324_v9 = vadd.f32 %v323_v7, %v322_v6 }
 0x1ae   :  { %v325_v11 = vrot.slane %v324_v9, 1 }
 0x1b0   :  { %v326_v13 = vadd.f32 %v325_v11, %v324_v9 }
 0x1b2   :  { %v337_v14 = vadd.f32 %v336_v12, %v326_v13 }
 0x1b4   :  { %338 = vst [vmem:[#allocation3] sm:$0x1] %v337_v14 }
 0x1b5   :  { %419 = shalt.err (!%p416_p4)
}
 0x1b6   :  { %348 = dma.vmem_to_hbm [thread:$0]  %s346_s14, 16, %s556_s7, [#allocation4]  }
 0x1b7   :  { %428 = dma.done.wait [#allocation4], 16  }
 0x1b8   :  { %429 = vsyncadd [#allocation4], 4294967280 }
 0x1b9   :  { %352 = vsyncpa [#allocation4], 1 }

</bundles_post_ra>
